<compile_context>
chip_gen: v7x
topology: tpu7x:2x2x1
jax: 0.10.0
libtpu: 0.0.40
codegen_flags: <defaults>
</compile_context>

<pallas_src>
import functools

import jax
import jax.numpy as jnp
from jax import lax
from jax.experimental import pallas as pl
from jax.experimental.pallas import tpu as pltpu


def rnn_encoder_kernel(x_ref, wih_ref, whh_ref, b_ref, hidden_ref, h_carry,
                       *, unroll):
    """One grid step = one (batch block, time chunk).

    x_ref:      (Tc, Bb, I)   input chunk, time-major, MXU dtype (bf16 or f32)
    wih_ref:    (I,  Hp)      W_ih^T (lane-padded), MXU dtype
    whh_ref:    (Hp, Hp)      W_hh^T (padded), MXU dtype
    b_ref:      (1,  Hp)      combined bias (b_ih + b_hh), float32
    hidden_ref: (Tc, Bb, Hp)  per-step hidden states (f32); also the VMEM staging
                              buffer for the hoisted input projection
    h_carry:    (Bb, Hp)      f32 scratch: hidden-state carry across time chunks
    """
    c = pl.program_id(1)          # time-chunk index (innermost, "arbitrary" axis)

    # h_0 = 0 at the first time chunk of every batch block (time axis only, so
    # this stays correct with the batch-parallel leading grid axis).
    @pl.when(c == 0)
    def _():
        h_carry[...] = jnp.zeros_like(h_carry)

    Tc, Bb, I = x_ref.shape
    Hp = hidden_ref.shape[-1]

    wih = wih_ref[...]            # (I, Hp)   MXU dtype
    whh = whh_ref[...]            # (Hp, Hp)  MXU dtype

    # Hoisted input projection: ONE (Tc*Bb, I) @ (I, Hp) MXU matmul per chunk.
    # Bb is a multiple of 8 (sublane tile), so collapsing (Tc, Bb, I)->(Tc*Bb, I)
    # never crosses an (8,128) tile boundary: a free relabeling, not a VMEM copy.
    z = jnp.dot(x_ref[...].reshape(Tc * Bb, I), wih,
                preferred_element_type=jnp.float32) + b_ref[...]   # (Tc*Bb, Hp) f32
    # Stage the projection into the output block (VMEM) so the recurrence never
    # holds the whole chunk's z in vregs (bounded register pressure, no spills).
    hidden_ref[...] = z.reshape(Tc, Bb, Hp)

    # Serial recurrence.  Only the small (Bb, Hp) @ (Hp, Hp) matmul + f32 tanh sit
    # on the latency-bound critical path; z_t comes back from VMEM (1 vld/step)
    # and is overwritten in place with h_t (full-tile unmasked store).
    def step(t, h):
        z_t = hidden_ref[t]                                        # (Bb, Hp) f32
        h_new = jnp.tanh(z_t + jnp.dot(h.astype(whh.dtype), whh,
                                       preferred_element_type=jnp.float32))
        hidden_ref[t] = h_new
        return h_new

    h = lax.fori_loop(0, Tc, step, h_carry[...], unroll=unroll)
    h_carry[...] = h              # carry to the next time chunk (written once)


def _round_up(v, m):
    return -(-v // m) * m


def _pick_batch_block(Bp, max_bb=64):
    """Largest multiple of 8 that divides Bp and is <= max_bb."""
    bb = max(8, min(Bp, max_bb) - (min(Bp, max_bb) % 8))
    while Bp % bb:
        bb -= 8
    return bb


def _pick_time_chunk(T, Bb, I, Hp, in_bytes, act_budget_bytes=32 * 1024 * 1024):
    """Largest Tc (multiple of 8, <= 512) whose double-buffered activations fit.

    Budget covers the double-buffered x input chunk (MXU dtype) and the
    double-buffered f32 hidden output chunk; conservative for v7x's 64 MiB VMEM.
    """
    per_step = 2 * Bb * (I * in_bytes + Hp * 4)
    tc = max(8, min(512, act_budget_bytes // max(per_step, 1)))
    tc -= tc % 8
    return min(max(tc, 8), _round_up(T, 8))


def encoder_forward(x, w_ih, w_hh, b_ih, b_hh, *, compute_dtype=jnp.bfloat16):
    """Pallas Encoder.forward (cell_type='RNN', num_layers=1, unidirectional).

    x: (B, T, I) float32, batch_first (like nn.RNN(batch_first=True)).
    w_ih: (H, I), w_hh: (H, H), b_ih / b_hh: (H,) -- nn.RNN parameter shapes.
    compute_dtype: dtype of the MXU operands only (bfloat16 for production on
        v5e/v6e/v7x; float32 for bit-tight checks).  Accumulation, bias add,
        tanh and the hidden carry are float32 in every case.
    Returns (hidden, out) = ((B, T, H), (1, B, H)) matching nn.RNN.
    """
    B, T, I = x.shape
    H = w_ih.shape[0]
    in_bytes = jnp.dtype(compute_dtype).itemsize

    # Lane/sublane-dense padded shapes.
    Bp = _round_up(B, 8)
    Hp = _round_up(H, 128)
    Bb = _pick_batch_block(Bp)
    Tc = _pick_time_chunk(T, Bb, I, Hp, in_bytes)
    Tp = _round_up(T, Tc)
    n_bblk, n_tchunk = Bp // Bb, Tp // Tc

    # Time-major, zero-padded operands.  Zero padding in batch/lanes/time never
    # contaminates the first T steps / first B rows / first H lanes we slice out
    # (padded W rows & columns are zero, padded bias is zero).
    x_tm = jnp.pad(jnp.transpose(x.astype(jnp.float32), (1, 0, 2)),
                   ((0, Tp - T), (0, Bp - B), (0, 0))).astype(compute_dtype)
    wih_t = jnp.pad(jnp.transpose(w_ih), ((0, 0), (0, Hp - H))).astype(compute_dtype)
    whh_t = jnp.pad(jnp.transpose(w_hh),
                    ((0, Hp - H), (0, Hp - H))).astype(compute_dtype)
    bias = jnp.pad((b_ih + b_hh).astype(jnp.float32), (0, Hp - H)).reshape(1, Hp)

    # Explicit VMEM budget (double-buffered activations + weights + carry), with
    # headroom, capped below v7x's 64 MiB physical VMEM.
    vmem_need = (2 * Tc * Bb * I * in_bytes
                 + 2 * Tc * Bb * Hp * 4
                 + 2 * (I * Hp + Hp * Hp) * in_bytes
                 + 2 * 2 * Hp * 4
                 + Bb * Hp * 4)
    vmem_limit = int(min(max(vmem_need * 3 // 2, 32 << 20), 60 << 20))

    cost = pl.CostEstimate(
        flops=2 * Tp * Bp * Hp * (I + Hp),
        transcendentals=Tp * Bp * Hp,
        bytes_accessed=(Tp * Bp * I * in_bytes + Tp * Bp * Hp * 4
                        + (I * Hp + Hp * Hp) * in_bytes + Hp * 4),
    )

    kernel = functools.partial(rnn_encoder_kernel, unroll=min(8, Tc))

    hidden_tm = pl.pallas_call(
        kernel,
        out_shape=jax.ShapeDtypeStruct((Tp, Bp, Hp), jnp.float32),
        grid_spec=pltpu.PrefetchScalarGridSpec(
            num_scalar_prefetch=0,
            grid=(n_bblk, n_tchunk),        # (parallel batch blocks, serial time)
            in_specs=[
                pl.BlockSpec((Tc, Bb, I), lambda b, c: (c, b, 0)),   # x chunk
                pl.BlockSpec((I, Hp), lambda b, c: (0, 0)),          # W_ih^T (resident)
                pl.BlockSpec((Hp, Hp), lambda b, c: (0, 0)),         # W_hh^T (resident)
                pl.BlockSpec((1, Hp), lambda b, c: (0, 0)),          # combined bias
            ],
            out_specs=pl.BlockSpec((Tc, Bb, Hp), lambda b, c: (c, b, 0)),
            scratch_shapes=[pltpu.VMEM((Bb, Hp), jnp.float32)],      # hidden carry
        ),
        compiler_params=pltpu.CompilerParams(
            dimension_semantics=("parallel", "arbitrary"),
            vmem_limit_bytes=vmem_limit,
        ),
        cost_estimate=cost,
    )(x_tm, wih_t, whh_t, bias)

    hidden_tm = hidden_tm[:T, :B, :H]               # drop time/batch/lane padding
    hidden = jnp.transpose(hidden_tm, (1, 0, 2))    # (B, T, H) batch_first
    out = hidden_tm[T - 1][None, :, :]              # (1, B, H) final hidden
    return hidden, out


def reference_forward(x, w_ih, w_hh, b_ih, b_hh):
    """Pure-JAX reference (lax.scan) for correctness checking."""
    B = x.shape[0]
    H = w_ih.shape[0]

    def step(h, x_t):
        h_new = jnp.tanh(x_t @ w_ih.T + b_ih + h @ w_hh.T + b_hh)
        return h_new, h_new

    h0 = jnp.zeros((B, H), jnp.float32)
    h_n, hs = jax.lax.scan(step, h0, jnp.transpose(x, (1, 0, 2)))
    return jnp.transpose(hs, (1, 0, 2)), h_n[None, :, :]


if __name__ == "__main__":
    # Small shapes consistent with Encoder(input_size, hidden_size):
    B, T, I, H = 2, 8, 16, 32

    key = jax.random.PRNGKey(0)
    kx, k1, k2, k3, k4 = jax.random.split(key, 5)

    # PyTorch-style uniform(-1/sqrt(H), 1/sqrt(H)) parameter init.
    bound = 1.0 / (H ** 0.5)
    x = jax.random.normal(kx, (B, T, I), dtype=jnp.float32)
    w_ih = jax.random.uniform(k1, (H, I), jnp.float32, -bound, bound)
    w_hh = jax.random.uniform(k2, (H, H), jnp.float32, -bound, bound)
    b_ih = jax.random.uniform(k3, (H,), jnp.float32, -bound, bound)
    b_hh = jax.random.uniform(k4, (H,), jnp.float32, -bound, bound)

    hidden_ref_, out_ref_ = reference_forward(x, w_ih, w_hh, b_ih, b_hh)

    # 1) f32 MXU operands: bit-tight check against the lax.scan reference.
    fwd_f32 = jax.jit(functools.partial(encoder_forward, compute_dtype=jnp.float32))
    hidden, out = jax.block_until_ready(fwd_f32(x, w_ih, w_hh, b_ih, b_hh))
    assert hidden.shape == (B, T, H) and out.shape == (1, B, H)
    assert jnp.allclose(hidden, hidden_ref_, atol=1e-4, rtol=1e-4)
    assert jnp.allclose(out, out_ref_, atol=1e-4, rtol=1e-4)

    # 2) Production path: bf16 MXU operands, f32 accumulation/tanh (looser tol).
    fwd_bf16 = jax.jit(functools.partial(encoder_forward, compute_dtype=jnp.bfloat16))
    hidden_b, out_b = jax.block_until_ready(fwd_bf16(x, w_ih, w_hh, b_ih, b_hh))
    assert hidden_b.shape == (B, T, H) and out_b.shape == (1, B, H)
    assert jnp.allclose(hidden_b, hidden_ref_, atol=5e-2, rtol=5e-2)
    assert jnp.allclose(out_b, out_ref_, atol=5e-2, rtol=5e-2)

    print("KERNEL_OK")
</pallas_src>

<mosaic_0001>
module attributes {stable_mosaic.version = 11 : i64} {
  func.func @rnn_encoder_kernel(%arg0: i32, %arg1: i32, %arg2: memref<8x8x16xf32, #tpu.memory_space<vmem>>, %arg3: memref<16x128xf32, #tpu.memory_space<vmem>>, %arg4: memref<128x128xf32, #tpu.memory_space<vmem>>, %arg5: memref<1x128xf32, #tpu.memory_space<vmem>>, %arg6: memref<8x8x128xf32, #tpu.memory_space<vmem>>, %arg7: memref<8x128xf32, #tpu.memory_space<vmem>>) attributes {dimension_semantics = [#tpu.dimension_semantics<parallel>, #tpu.dimension_semantics<arbitrary>], iteration_bounds = array<i64: 1, 1>, scalar_prefetch = 0 : i64, scratch_operands = 1 : i64, tpu.core_type = #tpu.core_type<tc>, window_params = [{transform_indices = @transform_0, window_bounds = array<i64: 8, 8, 16>}, {pipeline_mode = #tpu.pipeline_mode<synchronous>, transform_indices = @transform_1, window_bounds = array<i64: 16, 128>}, {pipeline_mode = #tpu.pipeline_mode<synchronous>, transform_indices = @transform_2, window_bounds = array<i64: 128, 128>}, {pipeline_mode = #tpu.pipeline_mode<synchronous>, transform_indices = @transform_3, window_bounds = array<i64: 1, 128>}, {transform_indices = @transform_4, window_bounds = array<i64: 8, 8, 128>}]} {
    %c0_i32 = arith.constant 0 : i32
    %0 = arith.cmpi eq, %arg1, %c0_i32 : i32
    %1 = arith.extui %0 : i1 to i32
    %c0_i32_0 = arith.constant 0 : i32
    %2 = arith.cmpi ne, %1, %c0_i32_0 : i32
    scf.if %2 {
      %cst_57 = arith.constant 0.000000e+00 : f32
      %95 = vector.broadcast %cst_57 : f32 to vector<8x128xf32>
      %c0_58 = arith.constant 0 : index
      %c0_59 = arith.constant 0 : index
      %96 = vector.load %arg7[%c0_58, %c0_59] : memref<8x128xf32, #tpu.memory_space<vmem>>, vector<8x128xf32>
      tpu.vector_store %arg7[%c0_58, %c0_59], %95 {strides = array<i32>} : memref<8x128xf32, #tpu.memory_space<vmem>>, vector<8x128xf32>,
    } else {
    }
    %c0 = arith.constant 0 : index
    %c0_1 = arith.constant 0 : index
    %3 = vector.load %arg3[%c0, %c0_1] : memref<16x128xf32, #tpu.memory_space<vmem>>, vector<16x128xf32>
    %c0_2 = arith.constant 0 : index
    %c0_3 = arith.constant 0 : index
    %4 = vector.load %arg4[%c0_2, %c0_3] : memref<128x128xf32, #tpu.memory_space<vmem>>, vector<128x128xf32>
    %c0_4 = arith.constant 0 : index
    %c0_5 = arith.constant 0 : index
    %c0_6 = arith.constant 0 : index
    %5 = vector.load %arg2[%c0_4, %c0_5, %c0_6] : memref<8x8x16xf32, #tpu.memory_space<vmem>>, vector<8x8x16xf32>
    %6 = vector.shape_cast %5 : vector<8x8x16xf32> to vector<64x16xf32>
    %cst = arith.constant dense<0.000000e+00> : vector<64x128xf32>
    %7 = tpu.matmul %6, %3, %cst {dimension_numbers = #tpu.dot_dimension_numbers<[1], [0], [0], [1], [0, 0, 1, 1], [], []>} : vector<64x16xf32>, vector<16x128xf32>, vector<64x128xf32> -> vector<64x128xf32>
    %c0_7 = arith.constant 0 : index
    %c0_8 = arith.constant 0 : index
    %8 = vector.load %arg5[%c0_7, %c0_8] : memref<1x128xf32, #tpu.memory_space<vmem>>, vector<1x128xf32>
    %9 = vector.broadcast %8 : vector<1x128xf32> to vector<64x128xf32>
    %10 = arith.addf %7, %9 : vector<64x128xf32>
    %11 = vector.shape_cast %10 : vector<64x128xf32> to vector<8x8x128xf32>
    %c0_9 = arith.constant 0 : index
    %c0_10 = arith.constant 0 : index
    %c0_11 = arith.constant 0 : index
    %12 = vector.load %arg6[%c0_9, %c0_10, %c0_11] : memref<8x8x128xf32, #tpu.memory_space<vmem>>, vector<8x8x128xf32>
    tpu.vector_store %arg6[%c0_9, %c0_10, %c0_11], %11 {strides = array<i32>} : memref<8x8x128xf32, #tpu.memory_space<vmem>>, vector<8x8x128xf32>,
    %c0_12 = arith.constant 0 : index
    %c0_13 = arith.constant 0 : index
    %13 = vector.load %arg7[%c0_12, %c0_13] : memref<8x128xf32, #tpu.memory_space<vmem>>, vector<8x128xf32>
    %c0_i32_14 = arith.constant 0 : i32
    %14 = arith.index_cast %c0_i32_14 : i32 to index
    %c0_15 = arith.constant 0 : index
    %c0_16 = arith.constant 0 : index
    %15 = vector.load %arg6[%14, %c0_15, %c0_16] : memref<8x8x128xf32, #tpu.memory_space<vmem>>, vector<1x8x128xf32>
    %16 = vector.shape_cast %15 : vector<1x8x128xf32> to vector<8x128xf32>
    %cst_17 = arith.constant dense<0.000000e+00> : vector<8x128xf32>
    %17 = tpu.matmul %13, %4, %cst_17 {dimension_numbers = #tpu.dot_dimension_numbers<[1], [0], [0], [1], [0, 0, 1, 1], [], []>} : vector<8x128xf32>, vector<128x128xf32>, vector<8x128xf32> -> vector<8x128xf32>
    %18 = arith.addf %16, %17 : vector<8x128xf32>
    %19 = math.tanh %18 : vector<8x128xf32>
    %20 = arith.index_cast %c0_i32_14 : i32 to index
    %c0_18 = arith.constant 0 : index
    %c0_19 = arith.constant 0 : index
    %21 = vector.load %arg6[%20, %c0_18, %c0_19] : memref<8x8x128xf32, #tpu.memory_space<vmem>>, vector<1x8x128xf32>
    %22 = vector.shape_cast %21 : vector<1x8x128xf32> to vector<8x128xf32>
    %23 = vector.shape_cast %19 : vector<8x128xf32> to vector<1x8x128xf32>
    tpu.vector_store %arg6[%20, %c0_18, %c0_19], %23 {strides = array<i32>} : memref<8x8x128xf32, #tpu.memory_space<vmem>>, vector<1x8x128xf32>,
    %c1_i32 = arith.constant 1 : i32
    %24 = arith.index_cast %c1_i32 : i32 to index
    %c0_20 = arith.constant 0 : index
    %c0_21 = arith.constant 0 : index
    %25 = vector.load %arg6[%24, %c0_20, %c0_21] : memref<8x8x128xf32, #tpu.memory_space<vmem>>, vector<1x8x128xf32>
    %26 = vector.shape_cast %25 : vector<1x8x128xf32> to vector<8x128xf32>
    %cst_22 = arith.constant dense<0.000000e+00> : vector<8x128xf32>
    %27 = tpu.matmul %19, %4, %cst_22 {dimension_numbers = #tpu.dot_dimension_numbers<[1], [0], [0], [1], [0, 0, 1, 1], [], []>} : vector<8x128xf32>, vector<128x128xf32>, vector<8x128xf32> -> vector<8x128xf32>
    %28 = arith.addf %26, %27 : vector<8x128xf32>
    %29 = math.tanh %28 : vector<8x128xf32>
    %30 = arith.index_cast %c1_i32 : i32 to index
    %c0_23 = arith.constant 0 : index
    %c0_24 = arith.constant 0 : index
    %31 = vector.load %arg6[%30, %c0_23, %c0_24] : memref<8x8x128xf32, #tpu.memory_space<vmem>>, vector<1x8x128xf32>
    %32 = vector.shape_cast %31 : vector<1x8x128xf32> to vector<8x128xf32>
    %33 = vector.shape_cast %29 : vector<8x128xf32> to vector<1x8x128xf32>
    tpu.vector_store %arg6[%30, %c0_23, %c0_24], %33 {strides = array<i32>} : memref<8x8x128xf32, #tpu.memory_space<vmem>>, vector<1x8x128xf32>,
    %c2_i32 = arith.constant 2 : i32
    %34 = arith.index_cast %c2_i32 : i32 to index
    %c0_25 = arith.constant 0 : index
    %c0_26 = arith.constant 0 : index
    %35 = vector.load %arg6[%34, %c0_25, %c0_26] : memref<8x8x128xf32, #tpu.memory_space<vmem>>, vector<1x8x128xf32>
    %36 = vector.shape_cast %35 : vector<1x8x128xf32> to vector<8x128xf32>
    %cst_27 = arith.constant dense<0.000000e+00> : vector<8x128xf32>
    %37 = tpu.matmul %29, %4, %cst_27 {dimension_numbers = #tpu.dot_dimension_numbers<[1], [0], [0], [1], [0, 0, 1, 1], [], []>} : vector<8x128xf32>, vector<128x128xf32>, vector<8x128xf32> -> vector<8x128xf32>
    %38 = arith.addf %36, %37 : vector<8x128xf32>
    %39 = math.tanh %38 : vector<8x128xf32>
    %40 = arith.index_cast %c2_i32 : i32 to index
    %c0_28 = arith.constant 0 : index
    %c0_29 = arith.constant 0 : index
    %41 = vector.load %arg6[%40, %c0_28, %c0_29] : memref<8x8x128xf32, #tpu.memory_space<vmem>>, vector<1x8x128xf32>
    %42 = vector.shape_cast %41 : vector<1x8x128xf32> to vector<8x128xf32>
    %43 = vector.shape_cast %39 : vector<8x128xf32> to vector<1x8x128xf32>
    tpu.vector_store %arg6[%40, %c0_28, %c0_29], %43 {strides = array<i32>} : memref<8x8x128xf32, #tpu.memory_space<vmem>>, vector<1x8x128xf32>,
    %c3_i32 = arith.constant 3 : i32
    %44 = arith.index_cast %c3_i32 : i32 to index
    %c0_30 = arith.constant 0 : index
    %c0_31 = arith.constant 0 : index
    %45 = vector.load %arg6[%44, %c0_30, %c0_31] : memref<8x8x128xf32, #tpu.memory_space<vmem>>, vector<1x8x128xf32>
    %46 = vector.shape_cast %45 : vector<1x8x128xf32> to vector<8x128xf32>
    %cst_32 = arith.constant dense<0.000000e+00> : vector<8x128xf32>
    %47 = tpu.matmul %39, %4, %cst_32 {dimension_numbers = #tpu.dot_dimension_numbers<[1], [0], [0], [1], [0, 0, 1, 1], [], []>} : vector<8x128xf32>, vector<128x128xf32>, vector<8x128xf32> -> vector<8x128xf32>
    %48 = arith.addf %46, %47 : vector<8x128xf32>
    %49 = math.tanh %48 : vector<8x128xf32>
    %50 = arith.index_cast %c3_i32 : i32 to index
    %c0_33 = arith.constant 0 : index
    %c0_34 = arith.constant 0 : index
    %51 = vector.load %arg6[%50, %c0_33, %c0_34] : memref<8x8x128xf32, #tpu.memory_space<vmem>>, vector<1x8x128xf32>
    %52 = vector.shape_cast %51 : vector<1x8x128xf32> to vector<8x128xf32>
    %53 = vector.shape_cast %49 : vector<8x128xf32> to vector<1x8x128xf32>
    tpu.vector_store %arg6[%50, %c0_33, %c0_34], %53 {strides = array<i32>} : memref<8x8x128xf32, #tpu.memory_space<vmem>>, vector<1x8x128xf32>,
    %c4_i32 = arith.constant 4 : i32
    %54 = arith.index_cast %c4_i32 : i32 to index
    %c0_35 = arith.constant 0 : index
    %c0_36 = arith.constant 0 : index
    %55 = vector.load %arg6[%54, %c0_35, %c0_36] : memref<8x8x128xf32, #tpu.memory_space<vmem>>, vector<1x8x128xf32>
    %56 = vector.shape_cast %55 : vector<1x8x128xf32> to vector<8x128xf32>
    %cst_37 = arith.constant dense<0.000000e+00> : vector<8x128xf32>
    %57 = tpu.matmul %49, %4, %cst_37 {dimension_numbers = #tpu.dot_dimension_numbers<[1], [0], [0], [1], [0, 0, 1, 1], [], []>} : vector<8x128xf32>, vector<128x128xf32>, vector<8x128xf32> -> vector<8x128xf32>
    %58 = arith.addf %56, %57 : vector<8x128xf32>
    %59 = math.tanh %58 : vector<8x128xf32>
    %60 = arith.index_cast %c4_i32 : i32 to index
    %c0_38 = arith.constant 0 : index
    %c0_39 = arith.constant 0 : index
    %61 = vector.load %arg6[%60, %c0_38, %c0_39] : memref<8x8x128xf32, #tpu.memory_space<vmem>>, vector<1x8x128xf32>
    %62 = vector.shape_cast %61 : vector<1x8x128xf32> to vector<8x128xf32>
    %63 = vector.shape_cast %59 : vector<8x128xf32> to vector<1x8x128xf32>
    tpu.vector_store %arg6[%60, %c0_38, %c0_39], %63 {strides = array<i32>} : memref<8x8x128xf32, #tpu.memory_space<vmem>>, vector<1x8x128xf32>,
    %c5_i32 = arith.constant 5 : i32
    %64 = arith.index_cast %c5_i32 : i32 to index
    %c0_40 = arith.constant 0 : index
    %c0_41 = arith.constant 0 : index
    %65 = vector.load %arg6[%64, %c0_40, %c0_41] : memref<8x8x128xf32, #tpu.memory_space<vmem>>, vector<1x8x128xf32>
    %66 = vector.shape_cast %65 : vector<1x8x128xf32> to vector<8x128xf32>
    %cst_42 = arith.constant dense<0.000000e+00> : vector<8x128xf32>
    %67 = tpu.matmul %59, %4, %cst_42 {dimension_numbers = #tpu.dot_dimension_numbers<[1], [0], [0], [1], [0, 0, 1, 1], [], []>} : vector<8x128xf32>, vector<128x128xf32>, vector<8x128xf32> -> vector<8x128xf32>
    %68 = arith.addf %66, %67 : vector<8x128xf32>
    %69 = math.tanh %68 : vector<8x128xf32>
    %70 = arith.index_cast %c5_i32 : i32 to index
    %c0_43 = arith.constant 0 : index
    %c0_44 = arith.constant 0 : index
    %71 = vector.load %arg6[%70, %c0_43, %c0_44] : memref<8x8x128xf32, #tpu.memory_space<vmem>>, vector<1x8x128xf32>
    %72 = vector.shape_cast %71 : vector<1x8x128xf32> to vector<8x128xf32>
    %73 = vector.shape_cast %69 : vector<8x128xf32> to vector<1x8x128xf32>
    tpu.vector_store %arg6[%70, %c0_43, %c0_44], %73 {strides = array<i32>} : memref<8x8x128xf32, #tpu.memory_space<vmem>>, vector<1x8x128xf32>,
    %c6_i32 = arith.constant 6 : i32
    %74 = arith.index_cast %c6_i32 : i32 to index
    %c0_45 = arith.constant 0 : index
    %c0_46 = arith.constant 0 : index
    %75 = vector.load %arg6[%74, %c0_45, %c0_46] : memref<8x8x128xf32, #tpu.memory_space<vmem>>, vector<1x8x128xf32>
    %76 = vector.shape_cast %75 : vector<1x8x128xf32> to vector<8x128xf32>
    %cst_47 = arith.constant dense<0.000000e+00> : vector<8x128xf32>
    %77 = tpu.matmul %69, %4, %cst_47 {dimension_numbers = #tpu.dot_dimension_numbers<[1], [0], [0], [1], [0, 0, 1, 1], [], []>} : vector<8x128xf32>, vector<128x128xf32>, vector<8x128xf32> -> vector<8x128xf32>
    %78 = arith.addf %76, %77 : vector<8x128xf32>
    %79 = math.tanh %78 : vector<8x128xf32>
    %80 = arith.index_cast %c6_i32 : i32 to index
    %c0_48 = arith.constant 0 : index
    %c0_49 = arith.constant 0 : index
    %81 = vector.load %arg6[%80, %c0_48, %c0_49] : memref<8x8x128xf32, #tpu.memory_space<vmem>>, vector<1x8x128xf32>
    %82 = vector.shape_cast %81 : vector<1x8x128xf32> to vector<8x128xf32>
    %83 = vector.shape_cast %79 : vector<8x128xf32> to vector<1x8x128xf32>
    tpu.vector_store %arg6[%80, %c0_48, %c0_49], %83 {strides = array<i32>} : memref<8x8x128xf32, #tpu.memory_space<vmem>>, vector<1x8x128xf32>,
    %c7_i32 = arith.constant 7 : i32
    %84 = arith.index_cast %c7_i32 : i32 to index
    %c0_50 = arith.constant 0 : index
    %c0_51 = arith.constant 0 : index
    %85 = vector.load %arg6[%84, %c0_50, %c0_51] : memref<8x8x128xf32, #tpu.memory_space<vmem>>, vector<1x8x128xf32>
    %86 = vector.shape_cast %85 : vector<1x8x128xf32> to vector<8x128xf32>
    %cst_52 = arith.constant dense<0.000000e+00> : vector<8x128xf32>
    %87 = tpu.matmul %79, %4, %cst_52 {dimension_numbers = #tpu.dot_dimension_numbers<[1], [0], [0], [1], [0, 0, 1, 1], [], []>} : vector<8x128xf32>, vector<128x128xf32>, vector<8x128xf32> -> vector<8x128xf32>
    %88 = arith.addf %86, %87 : vector<8x128xf32>
    %89 = math.tanh %88 : vector<8x128xf32>
    %90 = arith.index_cast %c7_i32 : i32 to index
    %c0_53 = arith.constant 0 : index
    %c0_54 = arith.constant 0 : index
    %91 = vector.load %arg6[%90, %c0_53, %c0_54] : memref<8x8x128xf32, #tpu.memory_space<vmem>>, vector<1x8x128xf32>
    %92 = vector.shape_cast %91 : vector<1x8x128xf32> to vector<8x128xf32>
    %93 = vector.shape_cast %89 : vector<8x128xf32> to vector<1x8x128xf32>
    tpu.vector_store %arg6[%90, %c0_53, %c0_54], %93 {strides = array<i32>} : memref<8x8x128xf32, #tpu.memory_space<vmem>>, vector<1x8x128xf32>,
    %c8_i32 = arith.constant 8 : i32
    %c0_55 = arith.constant 0 : index
    %c0_56 = arith.constant 0 : index
    %94 = vector.load %arg7[%c0_55, %c0_56] : memref<8x128xf32, #tpu.memory_space<vmem>>, vector<8x128xf32>
    tpu.vector_store %arg7[%c0_55, %c0_56], %89 {strides = array<i32>} : memref<8x128xf32, #tpu.memory_space<vmem>>, vector<8x128xf32>,
    return
  }
  func.func @transform_0(%arg0: i32, %arg1: i32) -> (i32, i32, i32) {
    %c0_i32 = arith.constant 0 : i32
    %c0_i32_0 = arith.constant 0 : i32
    return %arg1, %arg0, %c0_i32 : i32, i32, i32
  }
  func.func @transform_1(%arg0: i32, %arg1: i32) -> (i32, i32) {
    %c0_i32 = arith.constant 0 : i32
    %c0_i32_0 = arith.constant 0 : i32
    %c0_i32_1 = arith.constant 0 : i32
    return %c0_i32, %c0_i32_0 : i32, i32
  }
  func.func @transform_2(%arg0: i32, %arg1: i32) -> (i32, i32) {
    %c0_i32 = arith.constant 0 : i32
    %c0_i32_0 = arith.constant 0 : i32
    %c0_i32_1 = arith.constant 0 : i32
    return %c0_i32, %c0_i32_0 : i32, i32
  }
  func.func @transform_3(%arg0: i32, %arg1: i32) -> (i32, i32) {
    %c0_i32 = arith.constant 0 : i32
    %c0_i32_0 = arith.constant 0 : i32
    %c0_i32_1 = arith.constant 0 : i32
    return %c0_i32, %c0_i32_0 : i32, i32
  }
  func.func @transform_4(%arg0: i32, %arg1: i32) -> (i32, i32, i32) {
    %c0_i32 = arith.constant 0 : i32
    %c0_i32_0 = arith.constant 0 : i32
    return %arg1, %arg0, %c0_i32 : i32, i32, i32
  }
}

</mosaic_0001>

<bundles_post_ra>
// kernel: encoder_forward.1
= control target key start
LH: loop header
LB: loop body
LE: loop exit
PB: predicated region body
PF: predicated region fallthrough
CT: control target
= control target key end

     0   :  { %v1478_v0 = vmov 0.0|0.0   ;;  %vm1479_vm0 = vmmov 0   ;;  %v1480_v4 = vmov 0.0   ;;  %vm55_vm1 = vcmask 130048   ;;  %s1802_s2 = inlined_call_operand.vmem [shape: f32[128,128], index: 2, kind: input, shape index: {}]   ;;  %s1803_s1 = inlined_call_operand.vmem [shape: f32[16,128], index: 1, kind: input, shape index: {}]   ;;  %s1804_s0 = inlined_call_operand.vmem [shape: f32[8,8,16], index: 0, kind: input, shape index: {}]   ;;  %s1805_s3 = inlined_call_operand.vmem [shape: f32[1,128], index: 3, kind: input, shape index: {}]   ;;  %s1806_s4 = inlined_call_operand.vmem [shape: f32[8,8,128], index: 4, kind: output, shape index: {}]  }
   0x1   :  { %1267 = vmatprep.subr.bf16.mxu1 %v1478_v0  ;;  %v24_v1 = vld [vmem:[%s1802_s2] sm:$0xff]  ;;  %v25_v2 = vld [vmem:[%s1802_s2 + $0x8] sm:$0xff]  ;;  %v26_v3 = vld [vmem:[%s1802_s2 + $0x10] sm:$0xff]  ;;  %1015 = vmatprep.mubr.msk.f32.mxu1 %vm1479_vm0, %v1480_v4 }
   0x2   :  { %v1518_v5 = vpack.c.bf16 %v25_v2, %v24_v1  ;;  %v27_v6 = vld [vmem:[%s1802_s2 + $0x18] sm:$0xff]  ;;  %v22_v7 = vld [vmem:[%s1803_s1] sm:$0xff]  ;;  %v23_v9 = vld [vmem:[%s1803_s1 + $0x8] sm:$0xff] }
   0x3   :  { %v1527_v8 = vpack.c.bf16 %v27_v6, %v26_v3  ;;  %v28_v10 = vld [vmem:[%s1802_s2 + $0x20] sm:$0xff]  ;;  %v29_v11 = vld [vmem:[%s1802_s2 + $0x28] sm:$0xff]  ;;  %v1263_v12 = vpack.c.bf16 %v23_v9, %v22_v7  ;;  %v30_v16 = vld [vmem:[%s1802_s2 + $0x30] sm:$0xff] }
   0x4   :  { %1269 = vmatpush3.bf16.msra.mxu1 %v1518_v5  ;;  %v40_v13 = vld [vmem:[%s1804_s0] sm:$0xff]  ;;  %v1544_v14 = vpack.c.bf16 %v29_v11, %v28_v10  ;;  %v41_v15 = vld [vmem:[%s1804_s0 + $0x8] sm:$0xff]  ;;  %v31_v17 = vld [vmem:[%s1802_s2 + $0x38] sm:$0xff] }
   0x5   :  { %1270 = vmatprep.subr.bf16.mxu1 %v1478_v0  ;;  %971 = vmatprep.mubr.msk.f32.mxu0 %vm55_vm1, %v40_v13  ;;  %v1559_v18 = vpack.c.bf16 %v31_v17, %v30_v16  ;;  %v32_v19 = vld [vmem:[%s1802_s2 + $0x40] sm:$0xff]  ;;  %v33_v20 = vld [vmem:[%s1802_s2 + $0x48] sm:$0xff]  ;;  %v34_v22 = vld [vmem:[%s1802_s2 + $0x50] sm:$0xff] }
   0x6   :  { %1264 = vmatprep.subr.bf16.mxu0 %v1263_v12  ;;  %v1571_v21 = vpack.c.bf16 %v33_v20, %v32_v19  ;;  %v35_v23 = vld [vmem:[%s1802_s2 + $0x58] sm:$0xff]  ;;  %v36_v25 = vld [vmem:[%s1802_s2 + $0x60] sm:$0xff]  ;;  %v37_v26 = vld [vmem:[%s1802_s2 + $0x68] sm:$0xff] }
   0x7   :  { %1266 = vmatpush3.bf16.msra.mxu0 %v1263_v12  ;;  %v1583_v24 = vpack.c.bf16 %v35_v23, %v34_v22  ;;  %v1595_v27 = vpack.c.bf16 %v37_v26, %v36_v25  ;;  %v38_v28 = vld [vmem:[%s1802_s2 + $0x70] sm:$0xff]  ;;  %v39_v29 = vld [vmem:[%s1802_s2 + $0x78] sm:$0xff]  ;;  %v44_v33 = vld [vmem:[%s1804_s0 + $0x20] sm:$0xff] }
   0x8   :  { %1272 = vmatpush3.bf16.msra.mxu1 %v1527_v8  ;;  %1291 = vmatprep.subr.bf16.mxu0 %v1478_v0  ;;  %v1607_v30 = vpack.c.bf16 %v39_v29, %v38_v28  ;;  %v42_v31 = vld [vmem:[%s1804_s0 + $0x10] sm:$0xff]  ;;  %v43_v32 = vld [vmem:[%s1804_s0 + $0x18] sm:$0xff]  ;;  %v45_v34 = vld [vmem:[%s1804_s0 + $0x28] sm:$0xff] }
   0x9   :  { %1273 = vmatprep.subr.bf16.mxu1 %v1478_v0  ;;  %v46_v35 = vld [vmem:[%s1804_s0 + $0x30] sm:$0xff]  ;;  %v47_v36 = vld [vmem:[%s1804_s0 + $0x38] sm:$0xff]  ;;  %v1668_v39 = vld [vmem:[%s1805_s3] ss:$0 sm:$0xff] }
   0xa   :  { %972 = vmatmul.mubr.msk.f32.vlgmr.msra.gmra.mrb[0].mxu0 %vm55_vm1, %v41_v15 }
   0xb   :  { %1293 = vmatpush3.bf16.msra.mxu0 %v1518_v5  ;;  %974 = vmatprep.mubr.msk.f32.mxu0 %vm55_vm1, %v42_v31 }
   0xc   :  { %1275 = vmatpush3.bf16.msra.mxu1 %v1544_v14  ;;  %1294 = vmatprep.subr.bf16.mxu0 %v1478_v0 }
   0xd   :  { %1276 = vmatprep.subr.bf16.mxu1 %v1478_v0 }
   0xe   :  { %975 = vmatmul.mubr.msk.f32.gmra.mrb[2].mxu0 %vm55_vm1, %v43_v32 }
   0xf   :  { %1296 = vmatpush3.bf16.msra.mxu0 %v1527_v8  ;;  %977 = vmatprep.mubr.msk.f32.mxu0 %vm55_vm1, %v44_v33 }
  0x10   :  { %1278 = vmatpush3.bf16.msra.mxu1 %v1559_v18  ;;  %1297 = vmatprep.subr.bf16.mxu0 %v1478_v0 }
  0x11   :  { %1279 = vmatprep.subr.bf16.mxu1 %v1478_v0 }
  0x12   :  { %978 = vmatmul.mubr.msk.f32.gmra.mrb[4].mxu0 %vm55_vm1, %v45_v34 }
  0x13   :  { %1299 = vmatpush3.bf16.msra.mxu0 %v1544_v14  ;;  %980 = vmatprep.mubr.msk.f32.mxu0 %vm55_vm1, %v46_v35 }
  0x14   :  { %1281 = vmatpush3.bf16.msra.mxu1 %v1571_v21  ;;  %1300 = vmatprep.subr.bf16.mxu0 %v1478_v0 }
  0x15   :  { %1282 = vmatprep.subr.bf16.mxu1 %v1478_v0 }
  0x16   :  { %981 = vmatmul.mubr.msk.f32.gmra.mrb[6].mxu0 %vm55_vm1, %v47_v36 }
  0x17   :  { %1302 = vmatpush3.bf16.msra.mxu0 %v1559_v18  ;;  %1050 = vmatprep.mubr.msk.f32.mxu0 %vm1479_vm0, %v1480_v4 }
  0x18   :  { %1284 = vmatpush3.bf16.msra.mxu1 %v1583_v24  ;;  %1303 = vmatprep.subr.bf16.mxu0 %v1478_v0 }
  0x19   :  { %1285 = vmatprep.subr.bf16.mxu1 %v1478_v0 }
  0x1b   :  { %1305 = vmatpush3.bf16.msra.mxu0 %v1571_v21 }
  0x1c   :  { %1287 = vmatpush3.bf16.msra.mxu1 %v1595_v27  ;;  %1306 = vmatprep.subr.bf16.mxu0 %v1478_v0 }
  0x1d   :  { %1288 = vmatprep.subr.bf16.mxu1 %v1478_v0 }
  0x1f   :  { %1308 = vmatpush3.bf16.msra.mxu0 %v1583_v24 }
  0x20   :  { %1290 = vmatpush3.bf16.msra.mxu1 %v1607_v30  ;;  %1309 = vmatprep.subr.bf16.mxu0 %v1478_v0 }
  0x21   :  { %1315 = vmatprep.subr.bf16.mxu1 %v1478_v0 }
  0x23   :  { %1016 = vmatmul.mubr.f32.vlgmr.msra.gmra.mrb[0].mxu1 %v1480_v4  ;;  %1311 = vmatpush3.bf16.msra.mxu0 %v1595_v27 }
  0x24   :  { %1317 = vmatpush3.bf16.msra.mxu1 %v1518_v5  ;;  %1312 = vmatprep.subr.bf16.mxu0 %v1478_v0 }
  0x25   :  { %1318 = vmatprep.subr.bf16.mxu1 %v1478_v0  ;;  %1085 = vmatprep.mubr.msk.f32.mxu1 %vm1479_vm0, %v1480_v4 }
  0x27   :  { %1314 = vmatpush3.bf16.msra.mxu0 %v1607_v30 }
  0x28   :  { %1320 = vmatpush3.bf16.msra.mxu1 %v1527_v8  ;;  %1339 = vmatprep.subr.bf16.mxu0 %v1478_v0 }
  0x29   :  { %1321 = vmatprep.subr.bf16.mxu1 %v1478_v0 }
  0x2c   :  { %1323 = vmatpush3.bf16.msra.mxu1 %v1544_v14 }
  0x2d   :  { %1324 = vmatprep.subr.bf16.mxu1 %v1478_v0 }
  0x30   :  { %1326 = vmatpush3.bf16.msra.mxu1 %v1559_v18 }
  0x31   :  { %1327 = vmatprep.subr.bf16.mxu1 %v1478_v0 }
  0x34   :  { %1329 = vmatpush3.bf16.msra.mxu1 %v1571_v21 }
  0x35   :  { %1330 = vmatprep.subr.bf16.mxu1 %v1478_v0 }
  0x38   :  { %1332 = vmatpush3.bf16.msra.mxu1 %v1583_v24 }
  0x39   :  { %1333 = vmatprep.subr.bf16.mxu1 %v1478_v0 }
  0x3c   :  { %1335 = vmatpush3.bf16.msra.mxu1 %v1595_v27 }
  0x3d   :  { %1336 = vmatprep.subr.bf16.mxu1 %v1478_v0 }
  0x40   :  { %1338 = vmatpush3.bf16.msra.mxu1 %v1607_v30 }
  0x41   :  { %1363 = vmatprep.subr.bf16.mxu1 %v1478_v0 }
  0xdd   :  { %v973_v37 = vpop.f32.mrb[0].mxu0 }
  0xde   :  { %v146_v38 = vpop.f32.mrb[1].mxu0  ;;  %v152_v51 = vadd.f32 %v973_v37, %v1668_v39 }
  0xdf   :  { %v147_v40 = vadd.f32 %v1668_v39, %v146_v38 }
  0xe1   :  { %v976_v45 = vpop.f32.mrb[2].mxu0 }
  0xe2   :  { %v156_v46 = vpop.f32.mrb[3].mxu0  ;;  %v162_v61 = vadd.f32 %v976_v45, %v1668_v39 }
  0xe3   :  { %v157_v56 = vadd.f32 %v1668_v39, %v156_v46 }
  0xe5   :  { %v1692_v47 = vpop.f32.mrb[4].mxu0 }
  0xe6   :  { %v1694_v48 = vpop.f32.mrb[5].mxu0 }
  0xe7   :  { %v167_v3 = vadd.f32 %v1668_v39, %v1694_v48 }
  0xe9   :  { %v1696_v49 = vpop.f32.mrb[6].mxu0 }
  0xea   :  { %v1698_v50 = vpop.f32.mrb[7].mxu0  ;;  %v182_v17 = vadd.f32 %v1696_v49, %v1668_v39 }
  0xeb   :  { %v177_v13 = vadd.f32 %v1668_v39, %v1698_v50 }
  0xf6   :  { %v261_v41 = vpop.f32.mrb[0].mxu1 }
  0xf7   :  { %v265_v42 = vadd.f32 %v261_v41, %v147_v40  ;;  %v1017_v43 = vpop.f32.mrb[1].mxu1 }
  0xf9   :  { %1462 = vtanh.f32 %v265_v42 }
 0x103   :  { %v1463_v44 = vpop.eup %1462 }
 0x104   :  { %267 = vst [vmem:[%s1806_s4] sm:$0xff] %v1463_v44  ;;  %1051 = vmatmul.mubr.f32.vlgmr.msra.gmra.mrb[8].mxu0 %v1463_v44 }
 0x105   :  { %1341 = vmatpush3.bf16.msra.mxu0 %v1518_v5  ;;  %1120 = vmatprep.mubr.msk.f32.mxu0 %vm1479_vm0, %v1480_v4 }
 0x106   :  { %1342 = vmatprep.subr.bf16.mxu0 %v1478_v0 }
 0x109   :  { %1344 = vmatpush3.bf16.msra.mxu0 %v1527_v8 }
 0x10a   :  { %1345 = vmatprep.subr.bf16.mxu0 %v1478_v0 }
 0x10d   :  { %1347 = vmatpush3.bf16.msra.mxu0 %v1544_v14 }
 0x10e   :  { %1348 = vmatprep.subr.bf16.mxu0 %v1478_v0 }
 0x111   :  { %1350 = vmatpush3.bf16.msra.mxu0 %v1559_v18 }
 0x112   :  { %1351 = vmatprep.subr.bf16.mxu0 %v1478_v0 }
 0x115   :  { %1353 = vmatpush3.bf16.msra.mxu0 %v1571_v21 }
 0x116   :  { %1354 = vmatprep.subr.bf16.mxu0 %v1478_v0 }
 0x119   :  { %1356 = vmatpush3.bf16.msra.mxu0 %v1583_v24 }
 0x11a   :  { %1357 = vmatprep.subr.bf16.mxu0 %v1478_v0 }
 0x11d   :  { %1359 = vmatpush3.bf16.msra.mxu0 %v1595_v27 }
 0x11e   :  { %1360 = vmatprep.subr.bf16.mxu0 %v1478_v0 }
 0x121   :  { %1362 = vmatpush3.bf16.msra.mxu0 %v1607_v30 }
 0x122   :  { %1387 = vmatprep.subr.bf16.mxu0 %v1478_v0 }
 0x1d7   :  { %v336_v52 = vpop.f32.mrb[8].mxu0 }
 0x1d8   :  { %v340_v53 = vadd.f32 %v336_v52, %v152_v51  ;;  %v1052_v54 = vpop.f32.mrb[9].mxu0 }
 0x1da   :  { %1464 = vtanh.f32 %v340_v53 }
 0x1e4   :  { %v1465_v55 = vpop.eup %1464 }
 0x1e5   :  { %808 = vst [vmem:[%s1806_s4 + $0x8] sm:$0xff] %v1465_v55  ;;  %1086 = vmatmul.mubr.f32.vlgmr.msra.gmra.mrb[2].mxu1 %v1465_v55 }
 0x1e6   :  { %1365 = vmatpush3.bf16.msra.mxu1 %v1518_v5  ;;  %1155 = vmatprep.mubr.msk.f32.mxu1 %vm1479_vm0, %v1480_v4 }
 0x1e7   :  { %1366 = vmatprep.subr.bf16.mxu1 %v1478_v0 }
 0x1ea   :  { %1368 = vmatpush3.bf16.msra.mxu1 %v1527_v8 }
 0x1eb   :  { %1369 = vmatprep.subr.bf16.mxu1 %v1478_v0 }
 0x1ee   :  { %1371 = vmatpush3.bf16.msra.mxu1 %v1544_v14 }
 0x1ef   :  { %1372 = vmatprep.subr.bf16.mxu1 %v1478_v0 }
 0x1f2   :  { %1374 = vmatpush3.bf16.msra.mxu1 %v1559_v18 }
 0x1f3   :  { %1375 = vmatprep.subr.bf16.mxu1 %v1478_v0 }
 0x1f6   :  { %1377 = vmatpush3.bf16.msra.mxu1 %v1571_v21 }
 0x1f7   :  { %1378 = vmatprep.subr.bf16.mxu1 %v1478_v0 }
 0x1fa   :  { %1380 = vmatpush3.bf16.msra.mxu1 %v1583_v24 }
 0x1fb   :  { %1381 = vmatprep.subr.bf16.mxu1 %v1478_v0 }
 0x1fe   :  { %1383 = vmatpush3.bf16.msra.mxu1 %v1595_v27 }
 0x1ff   :  { %1384 = vmatprep.subr.bf16.mxu1 %v1478_v0 }
 0x202   :  { %1386 = vmatpush3.bf16.msra.mxu1 %v1607_v30 }
 0x203   :  { %1411 = vmatprep.subr.bf16.mxu1 %v1478_v0 }
 0x2b8   :  { %v411_v57 = vpop.f32.mrb[2].mxu1 }
 0x2b9   :  { %v415_v58 = vadd.f32 %v411_v57, %v157_v56  ;;  %v1087_v59 = vpop.f32.mrb[3].mxu1 }
 0x2bb   :  { %1466 = vtanh.f32 %v415_v58 }
 0x2c5   :  { %v1467_v60 = vpop.eup %1466 }
 0x2c6   :  { %810 = vst [vmem:[%s1806_s4 + $0x10] sm:$0xff] %v1467_v60  ;;  %1121 = vmatmul.mubr.f32.vlgmr.msra.gmra.mrb[10].mxu0 %v1467_v60 }
 0x2c7   :  { %1389 = vmatpush3.bf16.msra.mxu0 %v1518_v5  ;;  %1190 = vmatprep.mubr.msk.f32.mxu0 %vm1479_vm0, %v1480_v4 }
 0x2c8   :  { %1390 = vmatprep.subr.bf16.mxu0 %v1478_v0 }
 0x2cb   :  { %1392 = vmatpush3.bf16.msra.mxu0 %v1527_v8 }
 0x2cc   :  { %1393 = vmatprep.subr.bf16.mxu0 %v1478_v0 }
 0x2cf   :  { %1395 = vmatpush3.bf16.msra.mxu0 %v1544_v14 }
 0x2d0   :  { %1396 = vmatprep.subr.bf16.mxu0 %v1478_v0 }
 0x2d3   :  { %1398 = vmatpush3.bf16.msra.mxu0 %v1559_v18 }
 0x2d4   :  { %1399 = vmatprep.subr.bf16.mxu0 %v1478_v0 }
 0x2d7   :  { %1401 = vmatpush3.bf16.msra.mxu0 %v1571_v21 }
 0x2d8   :  { %1402 = vmatprep.subr.bf16.mxu0 %v1478_v0 }
 0x2db   :  { %1404 = vmatpush3.bf16.msra.mxu0 %v1583_v24 }
 0x2dc   :  { %1405 = vmatprep.subr.bf16.mxu0 %v1478_v0 }
 0x2df   :  { %1407 = vmatpush3.bf16.msra.mxu0 %v1595_v27 }
 0x2e0   :  { %1408 = vmatprep.subr.bf16.mxu0 %v1478_v0 }
 0x2e3   :  { %1410 = vmatpush3.bf16.msra.mxu0 %v1607_v30 }
 0x2e4   :  { %1435 = vmatprep.subr.bf16.mxu0 %v1478_v0 }
 0x399   :  { %v486_v62 = vpop.f32.mrb[10].mxu0 }
 0x39a   :  { %v490_v63 = vadd.f32 %v486_v62, %v162_v61  ;;  %v1122_v1 = vpop.f32.mrb[11].mxu0 }
 0x39c   :  { %1468 = vtanh.f32 %v490_v63 }
 0x3a6   :  { %v1469_v2 = vpop.eup %1468 }
 0x3a7   :  { %812 = vst [vmem:[%s1806_s4 + $0x18] sm:$0xff] %v1469_v2  ;;  %1156 = vmatmul.mubr.f32.vlgmr.msra.gmra.mrb[4].mxu1 %v1469_v2 }
 0x3a8   :  { %1413 = vmatpush3.bf16.msra.mxu1 %v1518_v5  ;;  %1225 = vmatprep.mubr.msk.f32.mxu1 %vm1479_vm0, %v1480_v4 }
 0x3a9   :  { %1414 = vmatprep.subr.bf16.mxu1 %v1478_v0 }
 0x3ac   :  { %1416 = vmatpush3.bf16.msra.mxu1 %v1527_v8 }
 0x3ad   :  { %1417 = vmatprep.subr.bf16.mxu1 %v1478_v0 }
 0x3b0   :  { %1419 = vmatpush3.bf16.msra.mxu1 %v1544_v14 }
 0x3b1   :  { %1420 = vmatprep.subr.bf16.mxu1 %v1478_v0 }
 0x3b4   :  { %1422 = vmatpush3.bf16.msra.mxu1 %v1559_v18 }
 0x3b5   :  { %1423 = vmatprep.subr.bf16.mxu1 %v1478_v0 }
 0x3b8   :  { %1425 = vmatpush3.bf16.msra.mxu1 %v1571_v21 }
 0x3b9   :  { %1426 = vmatprep.subr.bf16.mxu1 %v1478_v0 }
 0x3bc   :  { %1428 = vmatpush3.bf16.msra.mxu1 %v1583_v24 }
 0x3bd   :  { %1429 = vmatprep.subr.bf16.mxu1 %v1478_v0 }
 0x3c0   :  { %1431 = vmatpush3.bf16.msra.mxu1 %v1595_v27 }
 0x3c1   :  { %1432 = vmatprep.subr.bf16.mxu1 %v1478_v0 }
 0x3c4   :  { %1434 = vmatpush3.bf16.msra.mxu1 %v1607_v30 }
 0x47a   :  { %v561_v6 = vpop.f32.mrb[4].mxu1 }
 0x47b   :  { %v565_v7 = vadd.f32 %v561_v6, %v167_v3  ;;  %v1157_v9 = vpop.f32.mrb[5].mxu1 }
 0x47d   :  { %1470 = vtanh.f32 %v565_v7 }
 0x487   :  { %v1471_v10 = vpop.eup %1470 }
 0x488   :  { %814 = vst [vmem:[%s1806_s4 + $0x20] sm:$0xff] %v1471_v10  ;;  %1191 = vmatmul.mubr.f32.vlgmr.msra.gmra.mrb[12].mxu0 %v1471_v10 }
 0x489   :  { %1437 = vmatpush3.bf16.msra.mxu0 %v1518_v5  ;;  %1260 = vmatprep.mubr.msk.f32.mxu0 %vm1479_vm0, %v1480_v4  ;;  %v172_v4 = vadd.f32 %v1692_v47, %v1668_v39 }
 0x48a   :  { %1438 = vmatprep.subr.bf16.mxu0 %v1478_v0 }
 0x48d   :  { %1440 = vmatpush3.bf16.msra.mxu0 %v1527_v8 }
 0x48e   :  { %1441 = vmatprep.subr.bf16.mxu0 %v1478_v0 }
 0x491   :  { %1443 = vmatpush3.bf16.msra.mxu0 %v1544_v14 }
 0x492   :  { %1444 = vmatprep.subr.bf16.mxu0 %v1478_v0 }
 0x495   :  { %1446 = vmatpush3.bf16.msra.mxu0 %v1559_v18 }
 0x496   :  { %1447 = vmatprep.subr.bf16.mxu0 %v1478_v0 }
 0x499   :  { %1449 = vmatpush3.bf16.msra.mxu0 %v1571_v21 }
 0x49a   :  { %1450 = vmatprep.subr.bf16.mxu0 %v1478_v0 }
 0x49d   :  { %1452 = vmatpush3.bf16.msra.mxu0 %v1583_v24 }
 0x49e   :  { %1453 = vmatprep.subr.bf16.mxu0 %v1478_v0 }
 0x4a1   :  { %1455 = vmatpush3.bf16.msra.mxu0 %v1595_v27 }
 0x4a2   :  { %1456 = vmatprep.subr.bf16.mxu0 %v1478_v0 }
 0x4a5   :  { %1458 = vmatpush3.bf16.msra.mxu0 %v1607_v30 }
 0x55b   :  { %v636_v5 = vpop.f32.mrb[12].mxu0 }
 0x55c   :  { %v640_v8 = vadd.f32 %v636_v5, %v172_v4  ;;  %v1192_v11 = vpop.f32.mrb[13].mxu0 }
 0x55e   :  { %1472 = vtanh.f32 %v640_v8 }
 0x568   :  { %v1473_v12 = vpop.eup %1472 }
 0x569   :  { %816 = vst [vmem:[%s1806_s4 + $0x28] sm:$0xff] %v1473_v12  ;;  %1226 = vmatmul.mubr.f32.vlgmr.msra.gmra.mrb[6].mxu1 %v1473_v12 }
 0x63c   :  { %v711_v14 = vpop.f32.mrb[6].mxu1 }
 0x63d   :  { %v715_v0 = vadd.f32 %v711_v14, %v177_v13  ;;  %v1227_v15 = vpop.f32.mrb[7].mxu1 }
 0x63f   :  { %1474 = vtanh.f32 %v715_v0 }
 0x649   :  { %v1475_v16 = vpop.eup %1474 }
 0x64a   :  { %818 = vst [vmem:[%s1806_s4 + $0x30] sm:$0xff] %v1475_v16  ;;  %1261 = vmatmul.mubr.f32.vlgmr.msra.gmra.mrb[14].mxu0 %v1475_v16 }
 0x71d   :  { %v786_v18 = vpop.f32.mrb[14].mxu0 }
 0x71e   :  { %v790_v19 = vadd.f32 %v786_v18, %v182_v17  ;;  %v1262_v20 = vpop.f32.mrb[15].mxu0 }
 0x720   :  { %1476 = vtanh.f32 %v790_v19 }
 0x72a   :  { %v1477_v21 = vpop.eup %1476 }
 0x72b   :  { %820 = vst [vmem:[%s1806_s4 + $0x38] sm:$0xff] %v1477_v21 }

</bundles_post_ra>
